<compile_context>
chip_gen: v5e
topology: v5e:2x2
jax: 0.10.0
libtpu: 0.0.40
codegen_flags: <defaults>
</compile_context>

<pallas_src>
import functools

import numpy as np

import jax
import jax.numpy as jnp
from jax.experimental import pallas as pl
from jax.experimental.pallas import tpu as pltpu

PAD_INPUT_WORD_IDX = 0
EOS_VALUE = 1


def _round_up(x, m):
    return ((x + m - 1) // m) * m


# ------------------------------ fused kernel ------------------------------- #

def _decode_kernel(word_seq_ref, sos_ref, h_init_ref, c_init_ref,
                   w0_ref, b0_ref, wr_ref, br_ref, fc_w3_ref, fc_b_ref,
                   out_ref,
                   h_scr, c_scr, lab_scr, end_scr,
                   *, n_steps, B, H, layers, tv_pad, out_pad, blk):
    H2 = 2 * H

    # one-time state init (single grid step -> no pl.when needed)
    h_scr[...] = h_init_ref[...]
    c_scr[...] = c_init_ref[...]
    lab_scr[...] = sos_ref[...]
    end_scr[...] = jnp.zeros_like(end_scr)

    # loop-invariant constants: computed once per kernel invocation
    tag_iota = jax.lax.broadcasted_iota(jnp.int32, (B, tv_pad), 1)
    col_f = jax.lax.broadcasted_iota(jnp.int32, (B, out_pad), 1).astype(
        jnp.float32)

    def gate_update(gates, c_prev):
        # fused columns are [i | f | o] (sigmoid) then [g] (tanh), fwd/rev minor
        sig = jax.nn.sigmoid(gates[:, :3 * H2])
        g_g = jnp.tanh(gates[:, 3 * H2:])
        i_g = sig[:, 0 * H2:1 * H2]
        f_g = sig[:, 1 * H2:2 * H2]
        o_g = sig[:, 2 * H2:3 * H2]
        c_new = f_g * c_prev + i_g * g_g
        h_new = o_g * jnp.tanh(c_new)
        return h_new, c_new

    @pl.loop(0, n_steps)
    def _step(step):
        lbl = lab_scr[...]                                        # (B, 1) i32
        onehot = (tag_iota == lbl).astype(jnp.float32)            # (B, TVp)
        word_emb = word_seq_ref[step]                             # (B, Dw)

        # ---- layer 0: tag table folded into w0 -> input [onehot|word|h] ----
        h_prev = h_scr[0]
        c_prev = c_scr[0]
        z = jnp.concatenate([onehot, word_emb, h_prev], axis=1)
        gates = jnp.dot(z, w0_ref[...],
                        preferred_element_type=jnp.float32) + b0_ref[...]
        h_new, c_new = gate_update(gates, c_prev)
        h_scr[0] = h_new
        c_scr[0] = c_new
        x = h_new                                                 # (B, 2H)

        # ---- remaining layers (fwd+rev, W_ih+W_hh fused per layer) ---------
        for l in range(1, layers):
            h_prev = h_scr[l]
            c_prev = c_scr[l]
            z = jnp.concatenate([x, h_prev], axis=1)              # (B, 4H)
            gates = jnp.dot(z, wr_ref[l - 1],
                            preferred_element_type=jnp.float32) + br_ref[l - 1]
            h_new, c_new = gate_update(gates, c_prev)
            h_scr[l] = h_new
            c_scr[l] = c_new
            x = h_new

        cat_h = x                                  # last layer [h_fwd | h_rev]

        # ---- permute(1,0).reshape(B,-1) folded into an MXU contraction -----
        #      logits[r,o] = sum_{b,q} cat_h[b, r*blk+q] * fc_w[b + B*q, o]
        ch3 = jnp.stack([cat_h[:, r * blk:(r + 1) * blk] for r in range(B)],
                        axis=1)                                   # (B, B, blk)
        part = jnp.einsum('brq,bqo->bro', ch3, fc_w3_ref[...],
                          preferred_element_type=jnp.float32)     # (B, B, Op)
        logits = jnp.sum(part, axis=0) + fc_b_ref[...]            # (B, Op)

        # ---- greedy label (first-occurrence argmax) + EOS bookkeeping ------
        m = jnp.max(logits, axis=1, keepdims=True)
        cand = jnp.where(logits == m, col_f, jnp.float32(out_pad))
        label = jnp.min(cand, axis=1, keepdims=True).astype(jnp.int32)
        ended = end_scr[...]
        label = jnp.where(ended > 0, jnp.int32(EOS_VALUE), label)
        end_scr[...] = jnp.where(label == EOS_VALUE, jnp.int32(1), ended)
        lab_scr[...] = label

        # ---- exact softmax over lane-dense padded columns -------------------
        #      (pad columns carry a -1e30 bias -> exp is exactly 0)
        e = jnp.exp(logits - m)
        out_ref[step] = e / jnp.sum(e, axis=1, keepdims=True)


# ------------------------- host-side weight fusion ------------------------- #

# gate remap: source order [i, f, g, o] -> fused column order [i, f, o, g]
_GATE_DEST = {0: 0, 1: 1, 2: 3, 3: 2}


def _build_fused_layer0(cell_f, cell_r, tag_tab_pad, H, tag_dim, word_dim,
                        tv_pad):
    """(tv_pad + word_dim + 2H, 8H) layer-0 weight with the tag table folded in."""
    H2 = 2 * H
    x_w = tv_pad + word_dim
    W = jnp.zeros((x_w + H2, 4 * H2), jnp.float32)
    b = jnp.zeros((1, 4 * H2), jnp.float32)
    for g in range(4):                                   # source gates i,f,g,o
        for d, cell in enumerate((cell_f, cell_r)):      # fwd, rev
            c0 = _GATE_DEST[g] * H2 + d * H
            w_ih_g = cell["w_ih"][:, g * H:(g + 1) * H]
            w_hh_g = cell["w_hh"][:, g * H:(g + 1) * H]
            # tag-embedding gather folded through the (padded) tag table
            W = W.at[:tv_pad, c0:c0 + H].set(tag_tab_pad @ w_ih_g[:tag_dim, :])
            W = W.at[tv_pad:x_w, c0:c0 + H].set(w_ih_g[tag_dim:, :])
            W = W.at[x_w + d * H:x_w + (d + 1) * H, c0:c0 + H].set(w_hh_g)
            b = b.at[0, c0:c0 + H].set(cell["b"][0, g * H:(g + 1) * H])
    return W, b


def _build_fused_layer(cell_f, cell_r, H):
    """(4H, 8H) fused weight for layers > 0 (input block-diag over directions)."""
    H2 = 2 * H
    W = jnp.zeros((2 * H2, 4 * H2), jnp.float32)
    b = jnp.zeros((1, 4 * H2), jnp.float32)
    for g in range(4):
        for d, cell in enumerate((cell_f, cell_r)):
            c0 = _GATE_DEST[g] * H2 + d * H
            w_ih_g = cell["w_ih"][:, g * H:(g + 1) * H]
            w_hh_g = cell["w_hh"][:, g * H:(g + 1) * H]
            W = W.at[d * H:(d + 1) * H, c0:c0 + H].set(w_ih_g)
            W = W.at[H2 + d * H:H2 + (d + 1) * H, c0:c0 + H].set(w_hh_g)
            b = b.at[0, c0:c0 + H].set(cell["b"][0, g * H:(g + 1) * H])
    return W, b


def _build_fc3(fc_w, fc_b, H, B, out_size, out_pad):
    """fc_w3[b, q, o] = fc_w[b + B*q, o]; output lanes padded to out_pad with
    zero weights and a -1e30 bias so pad logits never win argmax and exp to 0."""
    H2 = 2 * H
    blk = H2 // B
    w3 = fc_w.reshape(blk, B, out_size).transpose(1, 0, 2)        # (B, blk, out)
    w3_pad = jnp.zeros((B, blk, out_pad), jnp.float32).at[:, :, :out_size].set(w3)
    b_pad = jnp.full((1, out_pad), -1e30, jnp.float32).at[0, :out_size].set(
        fc_b.reshape(-1))
    return w3_pad, b_pad


# --------------------------- parameter creation ---------------------------- #

def init_params(key, word_vocab, tag_vocab, word_dim, tag_dim, hidden, layers,
                output_size):
    input_size = word_dim + tag_dim
    scale = 1.0 / float(hidden) ** 0.5
    keys = iter(jax.random.split(key, 4 + 6 * layers))

    def uni(shape):
        return jax.random.uniform(next(keys), shape, jnp.float32, -scale, scale)

    params = {
        "word_emb": jax.random.normal(next(keys), (word_vocab, word_dim),
                                      jnp.float32),
        "tag_emb": jax.random.normal(next(keys), (tag_vocab, tag_dim),
                                     jnp.float32),
        "fc_w": uni((2 * hidden, output_size)),
        "fc_b": uni((1, output_size)),
        "c_0": jnp.zeros((layers, hidden), jnp.float32),
        "c_0_rev": jnp.zeros((layers, hidden), jnp.float32),
        "cells": [],
        "cells_rev": [],
    }
    for l in range(layers):
        in_size = input_size if l == 0 else hidden
        params["cells"].append({"w_ih": uni((in_size, 4 * hidden)),
                                "w_hh": uni((hidden, 4 * hidden)),
                                "b": uni((1, 4 * hidden))})   # b_ih + b_hh fused
        params["cells_rev"].append({"w_ih": uni((in_size, 4 * hidden)),
                                    "w_hh": uni((hidden, 4 * hidden)),
                                    "b": uni((1, 4 * hidden))})
    return params


# ------------------------------ decoder forward ---------------------------- #

def decoder_forward(params, xx_pad, yy_pad, h_t, h_t_rev, x_lens, layers,
                    hidden):
    B = len(x_lens)
    T = max(x_lens)
    n_steps = T + 1
    H = hidden
    H2 = 2 * H

    tag_tab = params["tag_emb"]
    word_tab = params["word_emb"]
    tag_vocab, tag_dim = tag_tab.shape
    word_dim = word_tab.shape[1]
    out_size = params["fc_w"].shape[1]
    out_pad = _round_up(out_size, 128)
    tv_pad = _round_up(tag_vocab, 128)
    blk = H2 // B

    # TODO(synk): the fused layout needs (2*hidden) % batch == 0 (permutation
    # fold) and output labels indexable in the tag table; fall back to an
    # unfused path otherwise.
    assert H2 % B == 0
    assert out_size <= tag_vocab

    # ---- one-time host-side operand preparation ----------------------------
    # word embeddings are not data-dependent: pre-gather one row per step
    widx = jnp.full((n_steps, B), PAD_INPUT_WORD_IDX, dtype=jnp.int32)
    widx = widx.at[:T, :].set(jnp.transpose(xx_pad.astype(jnp.int32)))
    word_emb_seq = jnp.take(word_tab, widx, axis=0)           # (T+1, B, Dw)

    sos = yy_pad[:, :1].astype(jnp.int32)                     # (B, 1)

    tag_tab_pad = jnp.zeros((tv_pad, tag_dim), jnp.float32).at[:tag_vocab].set(
        tag_tab)

    h_init = jnp.concatenate([h_t, h_t_rev], axis=-1)         # (L, B, 2H)
    c0 = jnp.broadcast_to(params["c_0"][:, None, :], (layers, B, H))
    c0r = jnp.broadcast_to(params["c_0_rev"][:, None, :], (layers, B, H))
    c_init = jnp.concatenate([c0, c0r], axis=-1)              # (L, B, 2H)

    w0, b0 = _build_fused_layer0(params["cells"][0], params["cells_rev"][0],
                                 tag_tab_pad, H, tag_dim, word_dim, tv_pad)
    if layers > 1:
        rest = [_build_fused_layer(params["cells"][l], params["cells_rev"][l], H)
                for l in range(1, layers)]
        wr = jnp.stack([w for w, _ in rest])                  # (L-1, 4H, 8H)
        br = jnp.stack([bb for _, bb in rest])                # (L-1, 1, 8H)
    else:
        wr = jnp.zeros((1, 2 * H2, 4 * H2), jnp.float32)      # never read
        br = jnp.zeros((1, 1, 4 * H2), jnp.float32)

    fc_w3, fc_b_pad = _build_fc3(params["fc_w"], params["fc_b"], H, B,
                                 out_size, out_pad)

    kernel = functools.partial(
        _decode_kernel, n_steps=n_steps, B=B, H=H, layers=layers,
        tv_pad=tv_pad, out_pad=out_pad, blk=blk)

    def full_spec(shape):
        nd = len(shape)
        return pl.BlockSpec(shape, lambda i, nd=nd: (0,) * nd)

    operands = (word_emb_seq, sos, h_init, c_init, w0, b0, wr, br,
                fc_w3, fc_b_pad)

    probs_steps = pl.pallas_call(
        kernel,
        out_shape=jax.ShapeDtypeStruct((n_steps, B, out_pad), jnp.float32),
        grid_spec=pltpu.PrefetchScalarGridSpec(
            num_scalar_prefetch=0,
            grid=(1,),                      # whole decode in one invocation
            in_specs=[full_spec(op.shape) for op in operands],
            out_specs=full_spec((n_steps, B, out_pad)),
            scratch_shapes=[
                pltpu.VMEM((layers, B, H2), jnp.float32),   # h state [fwd|rev]
                pltpu.VMEM((layers, B, H2), jnp.float32),   # c state [fwd|rev]
                pltpu.VMEM((B, 1), jnp.int32),              # previous label
                pltpu.VMEM((B, 1), jnp.int32),              # EOS mask
            ]),
        compiler_params=pltpu.CompilerParams(
            dimension_semantics=("arbitrary",)),
    )(*operands)

    # strip lane padding, reorder to (B, T+1, TD)
    return jnp.transpose(probs_steps[:, :, :out_size], (1, 0, 2))


# ----------------------- pure-numpy unfused reference ---------------------- #

def _reference_forward(params, xx_pad, yy_pad, h_t, h_t_rev, x_lens, layers,
                       hidden):
    """Direct (unfused) replica of the PyTorch module, for cross-checking."""
    B = len(x_lens)
    T = max(x_lens)
    H = hidden
    word_tab = np.asarray(params["word_emb"])
    tag_tab = np.asarray(params["tag_emb"])
    fc_w = np.asarray(params["fc_w"])
    fc_b = np.asarray(params["fc_b"]).reshape(-1)
    h = np.array(h_t, dtype=np.float32)
    hr = np.array(h_t_rev, dtype=np.float32)
    c = np.broadcast_to(np.asarray(params["c_0"])[:, None, :],
                        (layers, B, H)).copy()
    cr = np.broadcast_to(np.asarray(params["c_0_rev"])[:, None, :],
                         (layers, B, H)).copy()
    xx = np.asarray(xx_pad)

    def sigmoid(v):
        return 1.0 / (1.0 + np.exp(-v))

    def cell_step(cell, x, hprev, cprev):
        gates = (x @ np.asarray(cell["w_ih"]) + hprev @ np.asarray(cell["w_hh"])
                 + np.asarray(cell["b"]).reshape(-1))
        i_g = sigmoid(gates[:, 0 * H:1 * H])
        f_g = sigmoid(gates[:, 1 * H:2 * H])
        g_g = np.tanh(gates[:, 2 * H:3 * H])
        o_g = sigmoid(gates[:, 3 * H:4 * H])
        cn = f_g * cprev + i_g * g_g
        return o_g * np.tanh(cn), cn

    label = np.asarray(yy_pad)[:, 0].astype(np.int64)
    ended = np.zeros((B,), bool)
    outs = []
    for i in range(T + 1):
        tag_emb = tag_tab[label]
        widx = xx[:, i] if i < T else np.full((B,), PAD_INPUT_WORD_IDX, np.int64)
        word_emb = word_tab[widx]
        feed = np.concatenate([tag_emb, word_emb], axis=1)
        feed_r = feed
        for l in range(layers):
            h[l], c[l] = cell_step(params["cells"][l], feed, h[l], c[l])
            hr[l], cr[l] = cell_step(params["cells_rev"][l], feed_r, hr[l], cr[l])
            feed, feed_r = h[l], hr[l]
        cat = np.concatenate([h[-1], hr[-1]], axis=1)           # (B, 2H)
        word_hidden = cat.T.reshape(B, -1)                      # permute+reshape
        logits = word_hidden @ fc_w + fc_b
        lab = np.argmax(logits, axis=1)
        lab[ended] = EOS_VALUE
        ended |= lab == EOS_VALUE
        outs.append(logits)
        label = lab
    logits_all = np.stack(outs, axis=1)                         # (B, T+1, out)
    e = np.exp(logits_all - logits_all.max(-1, keepdims=True))
    return e / e.sum(-1, keepdims=True)


# ----------------------------------- main ----------------------------------- #

if __name__ == "__main__":
    WORD_VOCAB, TAG_VOCAB = 20, 10
    WORD_DIM, TAG_DIM = 16, 16          # input_size = 32
    HIDDEN, LAYERS = 32, 2
    OUTPUT = TAG_VOCAB
    B = 4
    x_lens = [5, 3, 4, 2]
    T = max(x_lens)

    key = jax.random.PRNGKey(0)
    k1, k2, k3, k4, k5 = jax.random.split(key, 5)
    params = init_params(k1, WORD_VOCAB, TAG_VOCAB, WORD_DIM, TAG_DIM,
                         HIDDEN, LAYERS, OUTPUT)
    xx_pad = jax.random.randint(k2, (B, T), 1, WORD_VOCAB, dtype=jnp.int32)
    yy_pad = jax.random.randint(k3, (B, T), 0, TAG_VOCAB, dtype=jnp.int32)
    h_t = jax.random.normal(k4, (LAYERS, B, HIDDEN), jnp.float32)
    h_t_rev = jax.random.normal(k5, (LAYERS, B, HIDDEN), jnp.float32)

    out = decoder_forward(params, xx_pad, yy_pad, h_t, h_t_rev, x_lens,
                          LAYERS, HIDDEN)
    out = jax.block_until_ready(out)
    assert out.shape == (B, T + 1, OUTPUT)
    assert bool(jnp.all(jnp.isfinite(out)))
    # probabilities over the real tag columns sum to ~1
    assert bool(jnp.all(jnp.abs(jnp.sum(out, axis=-1) - 1.0) < 1e-4))

    # numerical cross-check against an unfused reference of the PyTorch module
    ref = _reference_forward(params, xx_pad, yy_pad, h_t, h_t_rev, x_lens,
                             LAYERS, HIDDEN)
    max_err = float(np.max(np.abs(np.asarray(out) - ref)))
    assert max_err < 2e-3, f"mismatch vs unfused reference: {max_err}"
    print("KERNEL_OK")
</pallas_src>

<mosaic_0001>
module attributes {stable_mosaic.version = 11 : i64} {
  func.func @_decode_kernel(%arg0: i32, %arg1: memref<6x4x16xf32, #tpu.memory_space<vmem>>, %arg2: memref<4x1xi32, #tpu.memory_space<vmem>>, %arg3: memref<2x4x64xf32, #tpu.memory_space<vmem>>, %arg4: memref<2x4x64xf32, #tpu.memory_space<vmem>>, %arg5: memref<208x256xf32, #tpu.memory_space<vmem>>, %arg6: memref<1x256xf32, #tpu.memory_space<vmem>>, %arg7: memref<1x128x256xf32, #tpu.memory_space<vmem>>, %arg8: memref<1x1x256xf32, #tpu.memory_space<vmem>>, %arg9: memref<4x16x128xf32, #tpu.memory_space<vmem>>, %arg10: memref<1x128xf32, #tpu.memory_space<vmem>>, %arg11: memref<6x4x128xf32, #tpu.memory_space<vmem>>, %arg12: memref<2x4x64xf32, #tpu.memory_space<vmem>>, %arg13: memref<2x4x64xf32, #tpu.memory_space<vmem>>, %arg14: memref<4x1xi32, #tpu.memory_space<vmem>>, %arg15: memref<4x1xi32, #tpu.memory_space<vmem>>) attributes {dimension_semantics = [#tpu.dimension_semantics<arbitrary>], iteration_bounds = array<i64: 1>, scalar_prefetch = 0 : i64, scratch_operands = 4 : i64, tpu.core_type = #tpu.core_type<tc>, window_params = [{pipeline_mode = #tpu.pipeline_mode<synchronous>, transform_indices = @transform_0, window_bounds = array<i64: 6, 4, 16>}, {pipeline_mode = #tpu.pipeline_mode<synchronous>, transform_indices = @transform_1, window_bounds = array<i64: 4, 1>}, {pipeline_mode = #tpu.pipeline_mode<synchronous>, transform_indices = @transform_2, window_bounds = array<i64: 2, 4, 64>}, {pipeline_mode = #tpu.pipeline_mode<synchronous>, transform_indices = @transform_3, window_bounds = array<i64: 2, 4, 64>}, {pipeline_mode = #tpu.pipeline_mode<synchronous>, transform_indices = @transform_4, window_bounds = array<i64: 208, 256>}, {pipeline_mode = #tpu.pipeline_mode<synchronous>, transform_indices = @transform_5, window_bounds = array<i64: 1, 256>}, {pipeline_mode = #tpu.pipeline_mode<synchronous>, transform_indices = @transform_6, window_bounds = array<i64: 1, 128, 256>}, {pipeline_mode = #tpu.pipeline_mode<synchronous>, transform_indices = @transform_7, window_bounds = array<i64: 1, 1, 256>}, {pipeline_mode = #tpu.pipeline_mode<synchronous>, transform_indices = @transform_8, window_bounds = array<i64: 4, 16, 128>}, {pipeline_mode = #tpu.pipeline_mode<synchronous>, transform_indices = @transform_9, window_bounds = array<i64: 1, 128>}, {pipeline_mode = #tpu.pipeline_mode<synchronous>, transform_indices = @transform_10, window_bounds = array<i64: 6, 4, 128>}]} {
    %c0 = arith.constant 0 : index
    %c0_0 = arith.constant 0 : index
    %c0_1 = arith.constant 0 : index
    %0 = vector.load %arg3[%c0, %c0_0, %c0_1] : memref<2x4x64xf32, #tpu.memory_space<vmem>>, vector<2x4x64xf32>
    %c0_2 = arith.constant 0 : index
    %c0_3 = arith.constant 0 : index
    %c0_4 = arith.constant 0 : index
    %1 = vector.load %arg12[%c0_2, %c0_3, %c0_4] : memref<2x4x64xf32, #tpu.memory_space<vmem>>, vector<2x4x64xf32>
    tpu.vector_store %arg12[%c0_2, %c0_3, %c0_4], %0 {strides = array<i32>} : memref<2x4x64xf32, #tpu.memory_space<vmem>>, vector<2x4x64xf32>,
    %c0_5 = arith.constant 0 : index
    %c0_6 = arith.constant 0 : index
    %c0_7 = arith.constant 0 : index
    %2 = vector.load %arg4[%c0_5, %c0_6, %c0_7] : memref<2x4x64xf32, #tpu.memory_space<vmem>>, vector<2x4x64xf32>
    %c0_8 = arith.constant 0 : index
    %c0_9 = arith.constant 0 : index
    %c0_10 = arith.constant 0 : index
    %3 = vector.load %arg13[%c0_8, %c0_9, %c0_10] : memref<2x4x64xf32, #tpu.memory_space<vmem>>, vector<2x4x64xf32>
    tpu.vector_store %arg13[%c0_8, %c0_9, %c0_10], %2 {strides = array<i32>} : memref<2x4x64xf32, #tpu.memory_space<vmem>>, vector<2x4x64xf32>,
    %c0_11 = arith.constant 0 : index
    %c0_12 = arith.constant 0 : index
    %4 = vector.load %arg2[%c0_11, %c0_12] : memref<4x1xi32, #tpu.memory_space<vmem>>, vector<4x1xi32>
    %c0_13 = arith.constant 0 : index
    %c0_14 = arith.constant 0 : index
    %5 = vector.load %arg14[%c0_13, %c0_14] : memref<4x1xi32, #tpu.memory_space<vmem>>, vector<4x1xi32>
    tpu.vector_store %arg14[%c0_13, %c0_14], %4 {strides = array<i32>} : memref<4x1xi32, #tpu.memory_space<vmem>>, vector<4x1xi32>,
    %c0_i32 = arith.constant 0 : i32
    %6 = vector.broadcast %c0_i32 : i32 to vector<4x1xi32>
    %c0_15 = arith.constant 0 : index
    %c0_16 = arith.constant 0 : index
    %7 = vector.load %arg15[%c0_15, %c0_16] : memref<4x1xi32, #tpu.memory_space<vmem>>, vector<4x1xi32>
    tpu.vector_store %arg15[%c0_15, %c0_16], %6 {strides = array<i32>} : memref<4x1xi32, #tpu.memory_space<vmem>>, vector<4x1xi32>,
    %8 = tpu.iota {dimensions = array<i32: 1>} : vector<4x128xi32>
    %9 = tpu.iota {dimensions = array<i32: 1>} : vector<4x128xi32>
    %10 = arith.sitofp %9 : vector<4x128xi32> to vector<4x128xf32>
    %c0_i32_17 = arith.constant 0 : i32
    %c6_i32 = arith.constant 6 : i32
    %11 = arith.addi %c0_i32_17, %c6_i32 : i32
    %c1_i32 = arith.constant 1 : i32
    scf.for %arg16 = %c0_i32_17 to %11 step %c1_i32  : i32 {
      %c1_i32_19 = arith.constant 1 : i32
      %12 = arith.muli %arg16, %c1_i32_19 : i32
      %c0_i32_20 = arith.constant 0 : i32
      %13 = arith.addi %c0_i32_20, %12 : i32
      %c0_21 = arith.constant 0 : index
      %c0_22 = arith.constant 0 : index
      %14 = vector.load %arg14[%c0_21, %c0_22] : memref<4x1xi32, #tpu.memory_space<vmem>>, vector<4x1xi32>
      %15 = vector.broadcast %14 : vector<4x1xi32> to vector<4x128xi32>
      %16 = arith.cmpi eq, %8, %15 : vector<4x128xi32>
      %17 = arith.extui %16 : vector<4x128xi1> to vector<4x128xi32>
      %18 = arith.sitofp %17 : vector<4x128xi32> to vector<4x128xf32>
      %19 = arith.index_cast %13 : i32 to index
      %c0_23 = arith.constant 0 : index
      %c0_24 = arith.constant 0 : index
      %20 = vector.load %arg1[%19, %c0_23, %c0_24] : memref<6x4x16xf32, #tpu.memory_space<vmem>>, vector<1x4x16xf32>
      %21 = vector.shape_cast %20 : vector<1x4x16xf32> to vector<4x16xf32>
      %c0_25 = arith.constant 0 : index
      %c0_26 = arith.constant 0 : index
      %c0_27 = arith.constant 0 : index
      %22 = vector.load %arg12[%c0_25, %c0_26, %c0_27] : memref<2x4x64xf32, #tpu.memory_space<vmem>>, vector<1x4x64xf32>
      %23 = vector.shape_cast %22 : vector<1x4x64xf32> to vector<4x64xf32>
      %c0_28 = arith.constant 0 : index
      %c0_29 = arith.constant 0 : index
      %c0_30 = arith.constant 0 : index
      %24 = vector.load %arg13[%c0_28, %c0_29, %c0_30] : memref<2x4x64xf32, #tpu.memory_space<vmem>>, vector<1x4x64xf32>
      %25 = vector.shape_cast %24 : vector<1x4x64xf32> to vector<4x64xf32>
      %26 = tpu.concatenate %18, %21, %23 in 1 : vector<4x128xf32>, vector<4x16xf32>, vector<4x64xf32> -> vector<4x208xf32>
      %c0_31 = arith.constant 0 : index
      %c0_32 = arith.constant 0 : index
      %27 = vector.load %arg5[%c0_31, %c0_32] : memref<208x256xf32, #tpu.memory_space<vmem>>, vector<208x256xf32>
      %cst = arith.constant dense<0.000000e+00> : vector<4x256xf32>
      %28 = tpu.matmul %26, %27, %cst {dimension_numbers = #tpu.dot_dimension_numbers<[1], [0], [0], [1], [0, 0, 1, 1], [], []>} : vector<4x208xf32>, vector<208x256xf32>, vector<4x256xf32> -> vector<4x256xf32>
      %c0_33 = arith.constant 0 : index
      %c0_34 = arith.constant 0 : index
      %29 = vector.load %arg6[%c0_33, %c0_34] : memref<1x256xf32, #tpu.memory_space<vmem>>, vector<1x256xf32>
      %30 = vector.broadcast %29 : vector<1x256xf32> to vector<4x256xf32>
      %31 = arith.addf %28, %30 : vector<4x256xf32>
      %32 = vector.extract_strided_slice %31 {offsets = [0, 0], sizes = [4, 192], strides = [1, 1]} : vector<4x256xf32> to vector<4x192xf32>
      %33 = arith.negf %32 : vector<4x192xf32>
      %34 = math.exp %33 : vector<4x192xf32>
      %cst_35 = arith.constant 1.000000e+00 : f32
      %35 = vector.broadcast %cst_35 : f32 to vector<4x192xf32>
      %36 = arith.addf %35, %34 : vector<4x192xf32>
      %37 = arith.divf %35, %36 : vector<4x192xf32>
      %38 = vector.extract_strided_slice %31 {offsets = [0, 192], sizes = [4, 64], strides = [1, 1]} : vector<4x256xf32> to vector<4x64xf32>
      %39 = math.tanh %38 : vector<4x64xf32>
      %40 = vector.extract_strided_slice %37 {offsets = [0, 0], sizes = [4, 64], strides = [1, 1]} : vector<4x192xf32> to vector<4x64xf32>
      %41 = vector.extract_strided_slice %37 {offsets = [0, 64], sizes = [4, 64], strides = [1, 1]} : vector<4x192xf32> to vector<4x64xf32>
      %42 = vector.extract_strided_slice %37 {offsets = [0, 128], sizes = [4, 64], strides = [1, 1]} : vector<4x192xf32> to vector<4x64xf32>
      %43 = arith.mulf %41, %25 : vector<4x64xf32>
      %44 = arith.mulf %40, %39 : vector<4x64xf32>
      %45 = arith.addf %43, %44 : vector<4x64xf32>
      %46 = math.tanh %45 : vector<4x64xf32>
      %47 = arith.mulf %42, %46 : vector<4x64xf32>
      %c0_36 = arith.constant 0 : index
      %c0_37 = arith.constant 0 : index
      %c0_38 = arith.constant 0 : index
      %48 = vector.load %arg12[%c0_36, %c0_37, %c0_38] : memref<2x4x64xf32, #tpu.memory_space<vmem>>, vector<1x4x64xf32>
      %49 = vector.shape_cast %48 : vector<1x4x64xf32> to vector<4x64xf32>
      %50 = vector.shape_cast %47 : vector<4x64xf32> to vector<1x4x64xf32>
      tpu.vector_store %arg12[%c0_36, %c0_37, %c0_38], %50 {strides = array<i32>} : memref<2x4x64xf32, #tpu.memory_space<vmem>>, vector<1x4x64xf32>,
      %c0_39 = arith.constant 0 : index
      %c0_40 = arith.constant 0 : index
      %c0_41 = arith.constant 0 : index
      %51 = vector.load %arg13[%c0_39, %c0_40, %c0_41] : memref<2x4x64xf32, #tpu.memory_space<vmem>>, vector<1x4x64xf32>
      %52 = vector.shape_cast %51 : vector<1x4x64xf32> to vector<4x64xf32>
      %53 = vector.shape_cast %45 : vector<4x64xf32> to vector<1x4x64xf32>
      tpu.vector_store %arg13[%c0_39, %c0_40, %c0_41], %53 {strides = array<i32>} : memref<2x4x64xf32, #tpu.memory_space<vmem>>, vector<1x4x64xf32>,
      %c1 = arith.constant 1 : index
      %c0_42 = arith.constant 0 : index
      %c0_43 = arith.constant 0 : index
      %54 = vector.load %arg12[%c1, %c0_42, %c0_43] : memref<2x4x64xf32, #tpu.memory_space<vmem>>, vector<1x4x64xf32>
      %55 = vector.shape_cast %54 : vector<1x4x64xf32> to vector<4x64xf32>
      %c1_44 = arith.constant 1 : index
      %c0_45 = arith.constant 0 : index
      %c0_46 = arith.constant 0 : index
      %56 = vector.load %arg13[%c1_44, %c0_45, %c0_46] : memref<2x4x64xf32, #tpu.memory_space<vmem>>, vector<1x4x64xf32>
      %57 = vector.shape_cast %56 : vector<1x4x64xf32> to vector<4x64xf32>
      %58 = tpu.concatenate %47, %55 in 1 : vector<4x64xf32>, vector<4x64xf32> -> vector<4x128xf32>
      %c0_47 = arith.constant 0 : index
      %c0_48 = arith.constant 0 : index
      %c0_49 = arith.constant 0 : index
      %59 = vector.load %arg7[%c0_47, %c0_48, %c0_49] : memref<1x128x256xf32, #tpu.memory_space<vmem>>, vector<1x128x256xf32>
      %60 = vector.shape_cast %59 : vector<1x128x256xf32> to vector<128x256xf32>
      %cst_50 = arith.constant dense<0.000000e+00> : vector<4x256xf32>
      %61 = tpu.matmul %58, %60, %cst_50 {dimension_numbers = #tpu.dot_dimension_numbers<[1], [0], [0], [1], [0, 0, 1, 1], [], []>} : vector<4x128xf32>, vector<128x256xf32>, vector<4x256xf32> -> vector<4x256xf32>
      %c0_51 = arith.constant 0 : index
      %c0_52 = arith.constant 0 : index
      %c0_53 = arith.constant 0 : index
      %62 = vector.load %arg8[%c0_51, %c0_52, %c0_53] : memref<1x1x256xf32, #tpu.memory_space<vmem>>, vector<1x1x256xf32>
      %63 = vector.shape_cast %62 : vector<1x1x256xf32> to vector<1x256xf32>
      %64 = vector.broadcast %63 : vector<1x256xf32> to vector<4x256xf32>
      %65 = arith.addf %61, %64 : vector<4x256xf32>
      %66 = vector.extract_strided_slice %65 {offsets = [0, 0], sizes = [4, 192], strides = [1, 1]} : vector<4x256xf32> to vector<4x192xf32>
      %67 = arith.negf %66 : vector<4x192xf32>
      %68 = math.exp %67 : vector<4x192xf32>
      %cst_54 = arith.constant 1.000000e+00 : f32
      %69 = vector.broadcast %cst_54 : f32 to vector<4x192xf32>
      %70 = arith.addf %69, %68 : vector<4x192xf32>
      %71 = arith.divf %69, %70 : vector<4x192xf32>
      %72 = vector.extract_strided_slice %65 {offsets = [0, 192], sizes = [4, 64], strides = [1, 1]} : vector<4x256xf32> to vector<4x64xf32>
      %73 = math.tanh %72 : vector<4x64xf32>
      %74 = vector.extract_strided_slice %71 {offsets = [0, 0], sizes = [4, 64], strides = [1, 1]} : vector<4x192xf32> to vector<4x64xf32>
      %75 = vector.extract_strided_slice %71 {offsets = [0, 64], sizes = [4, 64], strides = [1, 1]} : vector<4x192xf32> to vector<4x64xf32>
      %76 = vector.extract_strided_slice %71 {offsets = [0, 128], sizes = [4, 64], strides = [1, 1]} : vector<4x192xf32> to vector<4x64xf32>
      %77 = arith.mulf %75, %57 : vector<4x64xf32>
      %78 = arith.mulf %74, %73 : vector<4x64xf32>
      %79 = arith.addf %77, %78 : vector<4x64xf32>
      %80 = math.tanh %79 : vector<4x64xf32>
      %81 = arith.mulf %76, %80 : vector<4x64xf32>
      %c1_55 = arith.constant 1 : index
      %c0_56 = arith.constant 0 : index
      %c0_57 = arith.constant 0 : index
      %82 = vector.load %arg12[%c1_55, %c0_56, %c0_57] : memref<2x4x64xf32, #tpu.memory_space<vmem>>, vector<1x4x64xf32>
      %83 = vector.shape_cast %82 : vector<1x4x64xf32> to vector<4x64xf32>
      %84 = vector.shape_cast %81 : vector<4x64xf32> to vector<1x4x64xf32>
      tpu.vector_store %arg12[%c1_55, %c0_56, %c0_57], %84 {strides = array<i32>} : memref<2x4x64xf32, #tpu.memory_space<vmem>>, vector<1x4x64xf32>,
      %c1_58 = arith.constant 1 : index
      %c0_59 = arith.constant 0 : index
      %c0_60 = arith.constant 0 : index
      %85 = vector.load %arg13[%c1_58, %c0_59, %c0_60] : memref<2x4x64xf32, #tpu.memory_space<vmem>>, vector<1x4x64xf32>
      %86 = vector.shape_cast %85 : vector<1x4x64xf32> to vector<4x64xf32>
      %87 = vector.shape_cast %79 : vector<4x64xf32> to vector<1x4x64xf32>
      tpu.vector_store %arg13[%c1_58, %c0_59, %c0_60], %87 {strides = array<i32>} : memref<2x4x64xf32, #tpu.memory_space<vmem>>, vector<1x4x64xf32>,
      %88 = vector.extract_strided_slice %81 {offsets = [0, 0], sizes = [4, 16], strides = [1, 1]} : vector<4x64xf32> to vector<4x16xf32>
      %89 = vector.extract_strided_slice %81 {offsets = [0, 16], sizes = [4, 16], strides = [1, 1]} : vector<4x64xf32> to vector<4x16xf32>
      %90 = vector.extract_strided_slice %81 {offsets = [0, 32], sizes = [4, 16], strides = [1, 1]} : vector<4x64xf32> to vector<4x16xf32>
      %91 = vector.extract_strided_slice %81 {offsets = [0, 48], sizes = [4, 16], strides = [1, 1]} : vector<4x64xf32> to vector<4x16xf32>
      %92 = vector.shape_cast %88 : vector<4x16xf32> to vector<4x1x16xf32>
      %93 = vector.shape_cast %89 : vector<4x16xf32> to vector<4x1x16xf32>
      %94 = vector.shape_cast %90 : vector<4x16xf32> to vector<4x1x16xf32>
      %95 = vector.shape_cast %91 : vector<4x16xf32> to vector<4x1x16xf32>
      %96 = tpu.concatenate %92, %93, %94, %95 in 1 : vector<4x1x16xf32>, vector<4x1x16xf32>, vector<4x1x16xf32>, vector<4x1x16xf32> -> vector<4x4x16xf32>
      %c0_61 = arith.constant 0 : index
      %c0_62 = arith.constant 0 : index
      %c0_63 = arith.constant 0 : index
      %97 = vector.load %arg9[%c0_61, %c0_62, %c0_63] : memref<4x16x128xf32, #tpu.memory_space<vmem>>, vector<4x16x128xf32>
      "tpu.trace_start"() <{level = 10 : i32, message = "brq,bqo->bro"}> : () -> ()
      %cst_64 = arith.constant dense<0.000000e+00> : vector<4x4x128xf32>
      %98 = tpu.matmul %96, %97, %cst_64 {dimension_numbers = #tpu.dot_dimension_numbers<[2], [1], [1], [2], [0, 0, 0, 1, 1, 2], [0], [0]>} : vector<4x4x16xf32>, vector<4x16x128xf32>, vector<4x4x128xf32> -> vector<4x4x128xf32>
      "tpu.trace_stop"() : () -> ()
      %cst_65 = arith.constant dense<0.000000e+00> : vector<4x128xf32>
      %99 = vector.multi_reduction <add>, %98, %cst_65 [0] : vector<4x4x128xf32> to vector<4x128xf32>
      %c0_66 = arith.constant 0 : index
      %c0_67 = arith.constant 0 : index
      %100 = vector.load %arg10[%c0_66, %c0_67] : memref<1x128xf32, #tpu.memory_space<vmem>>, vector<1x128xf32>
      %101 = vector.broadcast %100 : vector<1x128xf32> to vector<4x128xf32>
      %102 = arith.addf %99, %101 : vector<4x128xf32>
      %cst_68 = arith.constant dense<0xFF800000> : vector<4xf32>
      %103 = vector.multi_reduction <maximumf>, %102, %cst_68 [1] : vector<4x128xf32> to vector<4xf32>
      %104 = vector.shape_cast %103 : vector<4xf32> to vector<4x1xf32>
      %105 = vector.broadcast %104 : vector<4x1xf32> to vector<4x128xf32>
      %106 = arith.cmpf oeq, %102, %105 : vector<4x128xf32>
      %cst_69 = arith.constant 1.280000e+02 : f32
      %107 = vector.broadcast %cst_69 : f32 to vector<4x128xf32>
      %108 = arith.select %106, %10, %107 : vector<4x128xi1>, vector<4x128xf32>
      %cst_70 = arith.constant dense<0x7F800000> : vector<4xf32>
      %109 = vector.multi_reduction <minimumf>, %108, %cst_70 [1] : vector<4x128xf32> to vector<4xf32>
      %110 = vector.shape_cast %109 : vector<4xf32> to vector<4x1xf32>
      %111 = arith.fptosi %110 : vector<4x1xf32> to vector<4x1xi32>
      %c0_71 = arith.constant 0 : index
      %c0_72 = arith.constant 0 : index
      %112 = vector.load %arg15[%c0_71, %c0_72] : memref<4x1xi32, #tpu.memory_space<vmem>>, vector<4x1xi32>
      %c0_i32_73 = arith.constant 0 : i32
      %113 = vector.broadcast %c0_i32_73 : i32 to vector<4x1xi32>
      %114 = arith.cmpi sgt, %112, %113 : vector<4x1xi32>
      %c1_i32_74 = arith.constant 1 : i32
      %115 = vector.broadcast %c1_i32_74 : i32 to vector<4x1xi32>
      %116 = arith.select %114, %115, %111 : vector<4x1xi1>, vector<4x1xi32>
      %c1_i32_75 = arith.constant 1 : i32
      %117 = vector.broadcast %c1_i32_75 : i32 to vector<4x1xi32>
      %118 = arith.cmpi eq, %116, %117 : vector<4x1xi32>
      %c1_i32_76 = arith.constant 1 : i32
      %119 = vector.broadcast %c1_i32_76 : i32 to vector<4x1xi32>
      %120 = arith.select %118, %119, %112 : vector<4x1xi1>, vector<4x1xi32>
      %c0_77 = arith.constant 0 : index
      %c0_78 = arith.constant 0 : index
      %121 = vector.load %arg15[%c0_77, %c0_78] : memref<4x1xi32, #tpu.memory_space<vmem>>, vector<4x1xi32>
      tpu.vector_store %arg15[%c0_77, %c0_78], %120 {strides = array<i32>} : memref<4x1xi32, #tpu.memory_space<vmem>>, vector<4x1xi32>,
      %c0_79 = arith.constant 0 : index
      %c0_80 = arith.constant 0 : index
      %122 = vector.load %arg14[%c0_79, %c0_80] : memref<4x1xi32, #tpu.memory_space<vmem>>, vector<4x1xi32>
      tpu.vector_store %arg14[%c0_79, %c0_80], %116 {strides = array<i32>} : memref<4x1xi32, #tpu.memory_space<vmem>>, vector<4x1xi32>,
      %123 = vector.broadcast %104 : vector<4x1xf32> to vector<4x128xf32>
      %124 = arith.subf %102, %123 : vector<4x128xf32>
      %125 = math.exp %124 : vector<4x128xf32>
      %cst_81 = arith.constant dense<0.000000e+00> : vector<4xf32>
      %126 = vector.multi_reduction <add>, %125, %cst_81 [1] : vector<4x128xf32> to vector<4xf32>
      %127 = vector.shape_cast %126 : vector<4xf32> to vector<4x1xf32>
      %128 = vector.broadcast %127 : vector<4x1xf32> to vector<4x128xf32>
      %129 = arith.divf %125, %128 : vector<4x128xf32>
      %130 = arith.index_cast %13 : i32 to index
      %c0_82 = arith.constant 0 : index
      %c0_83 = arith.constant 0 : index
      %131 = vector.load %arg11[%130, %c0_82, %c0_83] : memref<6x4x128xf32, #tpu.memory_space<vmem>>, vector<1x4x128xf32>
      %132 = vector.shape_cast %131 : vector<1x4x128xf32> to vector<4x128xf32>
      %133 = vector.shape_cast %129 : vector<4x128xf32> to vector<1x4x128xf32>
      tpu.vector_store %arg11[%130, %c0_82, %c0_83], %133 {strides = array<i32>} : memref<6x4x128xf32, #tpu.memory_space<vmem>>, vector<1x4x128xf32>,
    }
    %c6_i32_18 = arith.constant 6 : i32
    return
  }
  func.func @transform_0(%arg0: i32) -> (i32, i32, i32) {
    %c0_i32 = arith.constant 0 : i32
    %c0_i32_0 = arith.constant 0 : i32
    %c0_i32_1 = arith.constant 0 : i32
    %c0_i32_2 = arith.constant 0 : i32
    return %c0_i32, %c0_i32_0, %c0_i32_1 : i32, i32, i32
  }
  func.func @transform_1(%arg0: i32) -> (i32, i32) {
    %c0_i32 = arith.constant 0 : i32
    %c0_i32_0 = arith.constant 0 : i32
    %c0_i32_1 = arith.constant 0 : i32
    return %c0_i32, %c0_i32_0 : i32, i32
  }
  func.func @transform_2(%arg0: i32) -> (i32, i32, i32) {
    %c0_i32 = arith.constant 0 : i32
    %c0_i32_0 = arith.constant 0 : i32
    %c0_i32_1 = arith.constant 0 : i32
    %c0_i32_2 = arith.constant 0 : i32
    return %c0_i32, %c0_i32_0, %c0_i32_1 : i32, i32, i32
  }
  func.func @transform_3(%arg0: i32) -> (i32, i32, i32) {
    %c0_i32 = arith.constant 0 : i32
    %c0_i32_0 = arith.constant 0 : i32
    %c0_i32_1 = arith.constant 0 : i32
    %c0_i32_2 = arith.constant 0 : i32
    return %c0_i32, %c0_i32_0, %c0_i32_1 : i32, i32, i32
  }
  func.func @transform_4(%arg0: i32) -> (i32, i32) {
    %c0_i32 = arith.constant 0 : i32
    %c0_i32_0 = arith.constant 0 : i32
    %c0_i32_1 = arith.constant 0 : i32
    return %c0_i32, %c0_i32_0 : i32, i32
  }
  func.func @transform_5(%arg0: i32) -> (i32, i32) {
    %c0_i32 = arith.constant 0 : i32
    %c0_i32_0 = arith.constant 0 : i32
    %c0_i32_1 = arith.constant 0 : i32
    return %c0_i32, %c0_i32_0 : i32, i32
  }
  func.func @transform_6(%arg0: i32) -> (i32, i32, i32) {
    %c0_i32 = arith.constant 0 : i32
    %c0_i32_0 = arith.constant 0 : i32
    %c0_i32_1 = arith.constant 0 : i32
    %c0_i32_2 = arith.constant 0 : i32
    return %c0_i32, %c0_i32_0, %c0_i32_1 : i32, i32, i32
  }
  func.func @transform_7(%arg0: i32) -> (i32, i32, i32) {
    %c0_i32 = arith.constant 0 : i32
    %c0_i32_0 = arith.constant 0 : i32
    %c0_i32_1 = arith.constant 0 : i32
    %c0_i32_2 = arith.constant 0 : i32
    return %c0_i32, %c0_i32_0, %c0_i32_1 : i32, i32, i32
  }
  func.func @transform_8(%arg0: i32) -> (i32, i32, i32) {
    %c0_i32 = arith.constant 0 : i32
    %c0_i32_0 = arith.constant 0 : i32
    %c0_i32_1 = arith.constant 0 : i32
    %c0_i32_2 = arith.constant 0 : i32
    return %c0_i32, %c0_i32_0, %c0_i32_1 : i32, i32, i32
  }
  func.func @transform_9(%arg0: i32) -> (i32, i32) {
    %c0_i32 = arith.constant 0 : i32
    %c0_i32_0 = arith.constant 0 : i32
    %c0_i32_1 = arith.constant 0 : i32
    return %c0_i32, %c0_i32_0 : i32, i32
  }
  func.func @transform_10(%arg0: i32) -> (i32, i32, i32) {
    %c0_i32 = arith.constant 0 : i32
    %c0_i32_0 = arith.constant 0 : i32
    %c0_i32_1 = arith.constant 0 : i32
    %c0_i32_2 = arith.constant 0 : i32
    return %c0_i32, %c0_i32_0, %c0_i32_1 : i32, i32, i32
  }
}

</mosaic_0001>

<bundles_post_ra>
// kernel: tpu_custom_call.1
= control target key start
LH: loop header
LB: loop body
LE: loop exit
PB: predicated region body
PF: predicated region fallthrough
CT: control target
= control target key end

     0   :  { %15 = vsyncpa [#allocation7], 0  ;;  %s1248_s0 = inlined_call_operand.hbm [shape: f32[6,4,16], index: 0, kind: input, shape index: {}]   ;;  %s1249_s1 = inlined_call_operand.vmem [shape: s32[4,1], index: 1, kind: input, shape index: {}]   ;;  %s1250_s2 = inlined_call_operand.hbm [shape: f32[2,4,64], index: 2, kind: input, shape index: {}]   ;;  %s1251_s3 = inlined_call_operand.hbm [shape: f32[2,4,64], index: 3, kind: input, shape index: {}]   ;;  %s1252_s4 = inlined_call_operand.hbm [shape: f32[208,256], index: 4, kind: input, shape index: {}]   ;;  %s1253_s5 = inlined_call_operand.vmem [shape: f32[1,256], index: 5, kind: input, shape index: {}]   ;;  %s1254_s6 = inlined_call_operand.hbm [shape: f32[1,128,256], index: 6, kind: input, shape index: {}]   ;;  %s1255_s7 = inlined_call_operand.vmem [shape: f32[1,1,256], index: 7, kind: input, shape index: {}]   ;;  %s1256_s8 = inlined_call_operand.hbm [shape: f32[4,16,128], index: 8, kind: input, shape index: {}]   ;;  %s1257_s9 = inlined_call_operand.vmem [shape: f32[1,128], index: 9, kind: input, shape index: {}]   ;;  %s1258_s10 = inlined_call_operand.hbm [shape: f32[6,4,128], index: 10, kind: output, shape index: {}]  }
   0x1   :  { %16 = vsyncpa [#allocation10], 0 }
   0x2   :  { %17 = vsyncpa [#allocation13], 0 }
   0x3   :  { %18 = vsyncpa [#allocation16], 0 }
   0x4   :  { %19 = vsyncpa [#allocation8], 0  ;;  %s39_s15 = sshll.u32 %s1250_s2, 4  ;;  %s1041_s16 = smov [#allocation9]   ;;  %s40_s15 = int_to_ptr.hbm [resolvable:$true] %s39_s15 }
   0x5   :  { %s41_s17 = sshll.u32 %s1041_s16, 4  ;;  %s65_s20 = sshll.u32 %s1252_s4, 4  ;;  %s42_s17 = int_to_ptr.vmem [resolvable:$true] %s41_s17  ;;  %s66_s20 = int_to_ptr.hbm [resolvable:$true] %s65_s20 }
   0x6   :  { %s1042_s21 = smov 64   ;;  %s1043_s22 = smov 4  }
   0x7   :  { %47 = dma.hbm_to_vmem [thread:$0]  %s40_s15, 128, %s42_s17, [#allocation10], %s1042_s21, %s1042_s21, %s1043_s22  }
   0x8   :  { %s1044_s23 = smov [#allocation12]   ;;  %s1045_s25 = smov 256  }
   0x9   :  { %s67_s24 = sshll.u32 %s1044_s23, 4  ;;  %s1046_s2 = smov 16   ;;  %s68_s24 = int_to_ptr.vmem [resolvable:$true] %s67_s24 }
   0xa   :  { %73 = dma.hbm_to_vmem [thread:$0]  %s66_s20, 6656, %s68_s24, [#allocation13], %s1045_s25, %s1045_s25, %s1046_s2  }
   0xb   :  { %s24_s28 = sshll.u32 %s1248_s0, 4  ;;  %s1047_s29 = smov [#allocation6]   ;;  %s25_s28 = int_to_ptr.hbm [resolvable:$true] %s24_s28 }
   0xc   :  { %s26_s4 = sshll.u32 %s1047_s29, 4  ;;  %s52_s12 = sshll.u32 %s1251_s3, 4  ;;  %s27_s4 = int_to_ptr.vmem [resolvable:$true] %s26_s4  ;;  %s53_s12 = int_to_ptr.hbm [resolvable:$true] %s52_s12 }
   0xd   :  { %32 = dma.hbm_to_vmem [thread:$0]  %s25_s28, 384, %s27_s4, [#allocation7], %s1042_s21, %s1042_s21, %s1043_s22  }
   0xe   :  { %s1048_s13 = smov [#allocation11]   ;;  %s80_s17 = sshll.u32 %s1254_s6, 4  ;;  %s81_s17 = int_to_ptr.hbm [resolvable:$true] %s80_s17 }
   0xf   :  { %s54_s14 = sshll.u32 %s1048_s13, 4  ;;  %s95_s3 = sshll.u32 %s1256_s8, 4  ;;  %s55_s14 = int_to_ptr.vmem [resolvable:$true] %s54_s14  ;;  %s96_s3 = int_to_ptr.hbm [resolvable:$true] %s95_s3 }
  0x10   :  { %60 = dma.hbm_to_vmem [thread:$0]  %s53_s12, 128, %s55_s14, [#allocation10], %s1042_s21, %s1042_s21, %s1043_s22  }
  0x11   :  { %s1049_s19 = smov [#allocation14]   ;;  %s1050_s23 = smov [#allocation15]  }
  0x12   :  { %s82_s20 = sshll.u32 %s1049_s19, 4  ;;  %s97_s24 = sshll.u32 %s1050_s23, 4  ;;  %s83_s20 = int_to_ptr.vmem [resolvable:$true] %s82_s20  ;;  %s98_s24 = int_to_ptr.vmem [resolvable:$true] %s97_s24 }
  0x13   :  { %88 = dma.hbm_to_vmem [thread:$0]  %s81_s17, 4096, %s83_s20, [#allocation13], %s1045_s25, %s1045_s25, %s1046_s2  }
  0x14   :  { %s1051_s26 = smov 128   ;;  %s1052_s6 = smov 8  }
  0x15   :  { %103 = dma.hbm_to_vmem [thread:$0]  %s96_s3, 1024, %s98_s24, [#allocation16], %s1051_s26, %s1051_s26, %s1052_s6  }
  0x16   :  { %1027 = dma.done.wait [#allocation7], 384  }
  0x17   :  { %1028 = vsyncadd [#allocation7], 4294966912 }
  0x18   :  { %1029 = dma.done.wait [#allocation10], 256  }
  0x19   :  { %1030 = vsyncadd [#allocation10], 4294967040 }
  0x1a   :  { %1031 = dma.done.wait [#allocation13], 10752  }
  0x1b   :  { %1032 = vsyncadd [#allocation13], 4294956544 }
  0x1c   :  { %1033 = dma.done.wait [#allocation16], 1024  }
  0x1d   :  { %1034 = vsyncadd [#allocation16], 4294966272  ;;  %vm140_vm0 = vcmask 3072   ;;  %v143_v0 = vlaneseq  ;;  %v1053_v1 = vmov 0   ;;  %vm132_vm1 = vcmask 519168   ;;  %s1156_s2 = smov 0  }
  0x1e   :  { %142 = vst.msk [vmem:[#allocation5] sm:$0xf] %vm140_vm0, %v1053_v1  ;;  %v130_v4 = vld [vmem:[#allocation9] sm:$0xf]  ;;  %v131_v5 = vld [vmem:[#allocation9 + $0x4] sm:$0xf] }
  0x1f   :  { %v1145_v2 = vand.u32 127, %v143_v0  ;;  %v135_v6 = vld [vmem:[#allocation11] sm:$0xf]  ;;  %133 = vst.msk [vmem:[#allocation2] sm:$0xf] %vm132_vm1, %v130_v4 }
  0x20   :  { %v136_v7 = vld [vmem:[#allocation11 + $0x4] sm:$0xf]  ;;  %134 = vst.msk [vmem:[#allocation2 + $0x4] sm:$0xf] %vm132_vm1, %v131_v5  ;;  %v139_v8 = vld [vmem:[%s1249_s1] sm:$0xf] }
  0x21   :  { %v145_v3 = vcvt.s32.f32 %v1145_v2  ;;  %137 = vst.msk [vmem:[#allocation3] sm:$0xf] %vm132_vm1, %v135_v6 }
  0x22   :  { %138 = vst.msk [vmem:[#allocation3 + $0x4] sm:$0xf] %vm132_vm1, %v136_v7 }
  0x23   :  { %141 = vst.msk [vmem:[#allocation4] sm:$0xf] %vm140_vm0, %v139_v8 }
  0x24 LB: > { %v1054_v10 = vmov 0   ;;  %v200_v11 = vld [vmem:[#allocation12 + $0xf0] sm:$0xff]  ;;  %v201_v12 = vld [vmem:[#allocation12 + $0xf8] sm:$0xff]  ;;  %v198_v13 = vld [vmem:[#allocation12 + $0xe0] sm:$0xff]  ;;  %s1055_s1 = smov 16   ;;  %s778_s27 = sshll.u32 %s1039_s2, 2  ;;  %s1039_s2 = sphi %s1156_s2, %s151_s2  }
  0x25   : > { %825 = vset.pattern.permute.xlu0 %v1054_v10  ;;  %232 = vmatpush.msra.mxu0 %v200_v11  ;;  %v199_v14 = vld [vmem:[#allocation12 + $0xe8] sm:$0xff]  ;;  %v196_v15 = vld [vmem:[#allocation12 + $0xd0] sm:$0xff]  ;;  %v197_v16 = vld [vmem:[#allocation12 + $0xd8] sm:$0xff]  ;;  %v1056_v1 = vmov 1.0   ;;  %s160_s28 = scalar_lea.vmem [#allocation6], %s778_s27  ;;  %vm168_vm3 = vcmask 130048  }
  0x26   : > { %272 = vmatpush.msra.mxu2 %v201_v12  ;;  %v194_v17 = vld [vmem:[#allocation12 + $0xc0] sm:$0xff]  ;;  %v195_v18 = vld [vmem:[#allocation12 + $0xc8] sm:$0xff]  ;;  %v192_v20 = vld [vmem:[#allocation12 + $0xb0] sm:$0xff]  ;;  %vm228_vm4 = vcmask 654336   ;;  %s1057_s30 = smov 64   ;;  %vm386_vm13 = vcmask 523264  }
  0x27   : > { %233 = vmatpush.msra.mxu0 %v198_v13  ;;  %v162_v19 = vld [vmem:[#allocation2] sm:$0xf]  ;;  %v193_v21 = vld [vmem:[#allocation12 + $0xb8] sm:$0xff]  ;;  %v220_v22 = vld [vmem:[#allocation12 + $0x190] sm:$0xff]  ;;  %s1058_s13 = smov 80   ;;  %s1059_s14 = smov 96  }
  0x28   : > { %273 = vmatpush.msra.mxu2 %v199_v14  ;;  %v221_v23 = vld [vmem:[#allocation12 + $0x198] sm:$0xff]  ;;  %v190_v24 = vld [vmem:[#allocation12 + $0xa0] sm:$0xff]  ;;  %258 = vmatpush.msra.mxu1 %v220_v22  ;;  %v191_v26 = vld [vmem:[#allocation12 + $0xa8] sm:$0xff]  ;;  %s1060_s15 = smov 112   ;;  %s744_s0 = scalar_lea.vmem [#allocation17], %s778_s27 }
  0x29   : > { %234 = vmatpush.msra.mxu0 %v196_v15  ;;  %v218_v25 = vld [vmem:[#allocation12 + $0x180] sm:$0xff]  ;;  %v219_v27 = vld [vmem:[#allocation12 + $0x188] sm:$0xff]  ;;  %v188_v28 = vld [vmem:[#allocation12 + $0x90] sm:$0xff]  ;;  %298 = vmatpush.msra.mxu3 %v221_v23  ;;  %s151_s2 = sadd.s32 1, %s1039_s2  }
  0x2a   : > { %v152_v9 = vld [vmem:[#allocation4] sm:$0xf]  ;;  %274 = vmatpush.msra.mxu2 %v197_v16  ;;  %v189_v30 = vld [vmem:[#allocation12 + $0x98] sm:$0xff]  ;;  %259 = vmatpush.msra.mxu1 %v218_v25  ;;  %v186_v32 = vld [vmem:[#allocation12 + $0x80] sm:$0xff]  ;;  %p148_p0 = scmp.ge.s32.totalorder %s151_s2, 6  }
  0x2b   : > { %154 = vperm.xlu0 %825, %v152_v9   ;;  %235 = vmatpush.msra.mxu0 %v194_v17  ;;  %v216_v29 = vld [vmem:[#allocation12 + $0x170] sm:$0xff]  ;;  %v217_v31 = vld [vmem:[#allocation12 + $0x178] sm:$0xff]  ;;  %v214_v33 = vld [vmem:[#allocation12 + $0x160] sm:$0xff]  ;;  %s752_s19 = sshll.u32 (%p148_p0), %s1258_s10, 4  ;;  %s1061_s20 = smov (%p148_p0), [#allocation17]   ;;  %s753_s19 = int_to_ptr.hbm [resolvable:$true] %s752_s19 }
  0x2c   : > { %275 = vmatpush.msra.mxu2 %v195_v18  ;;  %299 = vmatpush.msra.mxu3 %v219_v27  ;;  %v187_v34 = vld [vmem:[#allocation12 + $0x88] sm:$0xff]  ;;  %v184_v36 = vld [vmem:[#allocation12 + $0x70] sm:$0xff]  ;;  %v185_v38 = vld [vmem:[#allocation12 + $0x78] sm:$0xff]  ;;  %s750_s23 = sshll.u32 (%p148_p0), %s1061_s20, 4  ;;  %s751_s23 = int_to_ptr.vmem [resolvable:$true] %s750_s23 }
  0x2d   : > { %236 = vmatpush.msra.mxu0 %v192_v20  ;;  %260 = vmatpush.msra.mxu1 %v216_v29  ;;  %v215_v35 = vld [vmem:[#allocation12 + $0x168] sm:$0xff]  ;;  %v212_v37 = vld [vmem:[#allocation12 + $0x150] sm:$0xff]  ;;  %v213_v39 = vld [vmem:[#allocation12 + $0x158] sm:$0xff] }
  0x2e   : > { %276 = vmatpush.msra.mxu2 %v193_v21  ;;  %300 = vmatpush.msra.mxu3 %v217_v31  ;;  %v182_v40 = vld [vmem:[#allocation12 + $0x60] sm:$0xff]  ;;  %v183_v41 = vld [vmem:[#allocation12 + $0x68] sm:$0xff]  ;;  %v180_v42 = vld [vmem:[#allocation12 + $0x50] sm:$0xff] }
  0x2f   : > { %237 = vmatpush.msra.mxu0 %v190_v24  ;;  %261 = vmatpush.msra.mxu1 %v214_v33  ;;  %v181_v43 = vld [vmem:[#allocation12 + $0x58] sm:$0xff]  ;;  %v178_v44 = vld [vmem:[#allocation12 + $0x40] sm:$0xff]  ;;  %v179_v45 = vld [vmem:[#allocation12 + $0x48] sm:$0xff] }
  0x30   : > { %277 = vmatpush.msra.mxu2 %v191_v26  ;;  %301 = vmatpush.msra.mxu3 %v215_v35  ;;  %v176_v46 = vld [vmem:[#allocation12 + $0x30] sm:$0xff]  ;;  %v177_v47 = vld [vmem:[#allocation12 + $0x38] sm:$0xff]  ;;  %v174_v48 = vld [vmem:[#allocation12 + $0x20] sm:$0xff] }
  0x31   : > { %238 = vmatpush.msra.mxu0 %v188_v28  ;;  %262 = vmatpush.msra.mxu1 %v212_v37  ;;  %v175_v49 = vld [vmem:[#allocation12 + $0x28] sm:$0xff]  ;;  %v172_v50 = vld [vmem:[#allocation12 + $0x10] sm:$0xff]  ;;  %v173_v51 = vld [vmem:[#allocation12 + $0x18] sm:$0xff] }
  0x32   : > { %278 = vmatpush.msra.mxu2 %v189_v30  ;;  %302 = vmatpush.msra.mxu3 %v213_v39  ;;  %v170_v52 = vld [vmem:[#allocation12] sm:$0xff]  ;;  %v171_v54 = vld [vmem:[#allocation12 + $0x8] sm:$0xff]  ;;  %v208_v56 = vld [vmem:[#allocation12 + $0x130] sm:$0xff] }
  0x33   : > { %165 = vrot.lane.b32.xlu0 %v162_v19, %s1055_s1  ;;  %239 = vmatpush.msra.mxu0 %v186_v32  ;;  %v210_v53 = vld [vmem:[#allocation12 + $0x140] sm:$0xff]  ;;  %v211_v55 = vld [vmem:[#allocation12 + $0x148] sm:$0xff]  ;;  %v209_v57 = vld [vmem:[#allocation12 + $0x138] sm:$0xff] }
  0x34   : > { %279 = vmatpush.msra.mxu2 %v187_v34  ;;  %263 = vmatpush.msra.mxu1 %v210_v53  ;;  %v206_v58 = vld [vmem:[#allocation12 + $0x120] sm:$0xff]  ;;  %v207_v59 = vld [vmem:[#allocation12 + $0x128] sm:$0xff]  ;;  %v204_v60 = vld [vmem:[#allocation12 + $0x110] sm:$0xff] }
  0x35   : > { %240 = vmatpush.msra.mxu0 %v184_v36  ;;  %303 = vmatpush.msra.mxu3 %v211_v55  ;;  %v205_v61 = vld [vmem:[#allocation12 + $0x118] sm:$0xff]  ;;  %v202_v62 = vld [vmem:[#allocation12 + $0x100] sm:$0xff]  ;;  %v203_v63 = vld [vmem:[#allocation12 + $0x108] sm:$0xff] }
  0x36   : > { %280 = vmatpush.msra.mxu2 %v185_v38  ;;  %264 = vmatpush.msra.mxu1 %v208_v56  ;;  %v161_v4 = vld [vmem:[%s160_s28] sm:$0xf]  ;;  %v163_v14 = vld [vmem:[#allocation3] sm:$0xf]  ;;  %v379_v23 = vld [vmem:[#allocation2 + $0x4] sm:$0xf] }
  0x37   : > { %241 = vmatpush.msra.mxu0 %v182_v40  ;;  %304 = vmatpush.msra.mxu3 %v209_v57  ;;  %v222_v7 = vld [vmem:[%s1253_s5] sm:$0x3]  ;;  %v418_v36 = vld [vmem:[#allocation14 + $0xf0] sm:$0xff]  ;;  %v419_v37 = vld [vmem:[#allocation14 + $0xf8] sm:$0xff] }
  0x38   : > { %281 = vmatpush.msra.mxu2 %v183_v41  ;;  %265 = vmatpush.msra.mxu1 %v206_v58  ;;  %v225_v8 = vperm.slane %v222_v7, 1  ;;  %v224_v15 = vperm.slane %v222_v7, 0  ;;  %v416_v38 = vld [vmem:[#allocation14 + $0xe0] sm:$0xff]  ;;  %v417_v39 = vld [vmem:[#allocation14 + $0xe8] sm:$0xff]  ;;  %v414_v40 = vld [vmem:[#allocation14 + $0xd0] sm:$0xff] }
  0x39   : > { %242 = vmatpush.msra.mxu0 %v180_v42  ;;  %305 = vmatpush.msra.mxu3 %v207_v59  ;;  %v415_v41 = vld [vmem:[#allocation14 + $0xd8] sm:$0xff]  ;;  %v412_v42 = vld [vmem:[#allocation14 + $0xc0] sm:$0xff]  ;;  %v401_v55 = vld [vmem:[#allocation14 + $0x68] sm:$0xff] }
  0x3a   : > { %282 = vmatpush.msra.mxu2 %v181_v43  ;;  %266 = vmatpush.msra.mxu1 %v204_v60  ;;  %v413_v43 = vld [vmem:[#allocation14 + $0xc8] sm:$0xff]  ;;  %v403_v53 = vld [vmem:[#allocation14 + $0x78] sm:$0xff]  ;;  %v398_v57 = vld [vmem:[#allocation14 + $0x50] sm:$0xff] }
  0x3b   : > { %243 = vmatpush.msra.mxu0 %v178_v44  ;;  %306 = vmatpush.msra.mxu3 %v205_v61  ;;  %v410_v44 = vld [vmem:[#allocation14 + $0xb0] sm:$0xff]  ;;  %v399_v58 = vld [vmem:[#allocation14 + $0x58] sm:$0xff]  ;;  %v396_v59 = vld [vmem:[#allocation14 + $0x40] sm:$0xff] }
  0x3c   : > { %283 = vmatpush.msra.mxu2 %v179_v45  ;;  %267 = vmatpush.msra.mxu1 %v202_v62  ;;  %v411_v45 = vld [vmem:[#allocation14 + $0xb8] sm:$0xff]  ;;  %v397_v60 = vld [vmem:[#allocation14 + $0x48] sm:$0xff] }
  0x3d   : > { %244 = vmatpush.msra.mxu0 %v176_v46  ;;  %307 = vmatpush.msra.mxu3 %v203_v63  ;;  %v408_v46 = vld [vmem:[#allocation14 + $0xa0] sm:$0xff]  ;;  %v394_v63 = vld [vmem:[#allocation14 + $0x30] sm:$0xff] }
  0x3e   : > { %284 = vmatpush.msra.mxu2 %v177_v47  ;;  %383 = vrot.lane.b32.xlu0 %v379_v23, %s1057_s30  ;;  %v409_v47 = vld [vmem:[#allocation14 + $0xa8] sm:$0xff] }
  0x3f   : > { %245 = vmatpush.msra.mxu0 %v174_v48  ;;  %426 = vmatpush.msrb.mxu1 %v418_v36  ;;  %v406_v48 = vld [vmem:[#allocation14 + $0x90] sm:$0xff] }
  0x40   : > { %285 = vmatpush.msra.mxu2 %v175_v49  ;;  %446 = vmatpush.msrb.mxu3 %v419_v37  ;;  %v407_v49 = vld [vmem:[#allocation14 + $0x98] sm:$0xff] }
  0x41   : > { %246 = vmatpush.msra.mxu0 %v172_v50  ;;  %427 = vmatpush.msrb.mxu1 %v416_v38  ;;  %v404_v50 = vld [vmem:[#allocation14 + $0x80] sm:$0xff] }
  0x42   : > { %286 = vmatpush.msra.mxu2 %v173_v51  ;;  %447 = vmatpush.msrb.mxu3 %v417_v39  ;;  %v405_v51 = vld [vmem:[#allocation14 + $0x88] sm:$0xff] }
  0x43   : > { %247 = vmatpush.msra.mxu0 %v170_v52  ;;  %428 = vmatpush.msrb.mxu1 %v414_v40  ;;  %v402_v52 = vld [vmem:[#allocation14 + $0x70] sm:$0xff] }
  0x44   : > { %287 = vmatpush.msra.mxu2 %v171_v54  ;;  %448 = vmatpush.msrb.mxu3 %v415_v41  ;;  %v400_v54 = vld [vmem:[#allocation14 + $0x60] sm:$0xff] }
  0x45   : > { %429 = vmatpush.msrb.mxu1 %v412_v42 }
  0x46   : > { %449 = vmatpush.msrb.mxu3 %v413_v43 }
  0x47   : > { %430 = vmatpush.msrb.mxu1 %v410_v44 }
  0x48   : > { %450 = vmatpush.msrb.mxu3 %v411_v45 }
  0x49   : > { %431 = vmatpush.msrb.mxu1 %v408_v46 }
  0x4a   : > { %451 = vmatpush.msrb.mxu3 %v409_v47 }
  0x4b   : > { %432 = vmatpush.msrb.mxu1 %v406_v48 }
  0x4c   : > { %452 = vmatpush.msrb.mxu3 %v407_v49 }
  0x4d   : > { %433 = vmatpush.msrb.mxu1 %v404_v50 }
  0x4e   : > { %453 = vmatpush.msrb.mxu3 %v405_v51 }
  0x4f   : > { %434 = vmatpush.msrb.mxu1 %v402_v52 }
  0x50   : > { %454 = vmatpush.msrb.mxu3 %v403_v53 }
  0x51   : > { %435 = vmatpush.msrb.mxu1 %v400_v54 }
  0x52   : > { %455 = vmatpush.msrb.mxu3 %v401_v55 }
  0x53   : > { %436 = vmatpush.msrb.mxu1 %v398_v57 }
  0x54   : > { %456 = vmatpush.msrb.mxu3 %v399_v58 }
  0x55   : > { %437 = vmatpush.msrb.mxu1 %v396_v59 }
  0x56   : > { %457 = vmatpush.msrb.mxu3 %v397_v60 }
  0x57   : > { %438 = vmatpush.msrb.mxu1 %v394_v63 }
  0x9d   : > { %v155_v0 = vpop.permute.xlu0 %154 }
  0x9e   : > { %vm156_vm2 = vcmp.eq.s32.totalorder %v1145_v2, %v155_v0  ;;  %v395_v0 = vld [vmem:[#allocation14 + $0x38] sm:$0xff] }
  0x9f   : > { %779 = vmatmul.msk.f32.vlgmr.msra.gmra.mxu0 %vm156_vm2, %v1056_v1  ;;  %781 = vmatmul.msk.f32.vlgmr.msra.gmra.mxu2 %vm156_vm2, %v1056_v1 }
  0xa0   : > { %458 = vmatpush.msrb.mxu3 %v395_v0 }
  0xa5   : > { %v166_v5 = vpop.permute.xlu0 %165 }
  0xa6   : > { %v169_v6 = vsel %vm168_vm3, %v161_v4, %v166_v5  ;;  %v392_v4 = vld [vmem:[#allocation14 + $0x20] sm:$0xff]  ;;  %v393_v5 = vld [vmem:[#allocation14 + $0x28] sm:$0xff] }
  0xa7   : > { %780 = vmatmul.msk.f32.vlgmr.msra.gmra.mxu1 %vm228_vm4, %v169_v6  ;;  %782 = vmatmul.msk.f32.vlgmr.msra.gmra.mxu3 %vm228_vm4, %v169_v6 }
  0xa8   : > { %439 = vmatpush.msrb.mxu1 %v392_v4  ;;  %459 = vmatpush.msrb.mxu3 %v393_v5 }
 0x11c   : > { %v249_v16 = vpop.f32.mrf.mxu0 }
 0x11d   : > { %v250_v18 = vadd.f32 %v249_v16, %v224_v15  ;;  %v381_v15 = vld [vmem:[#allocation3 + $0x4] sm:$0xf] }
 0x122   : > { %v289_v9 = vpop.f32.mrf.mxu2 }
 0x123   : > { %v290_v10 = vadd.f32 %v289_v9, %v225_v8 }
 0x124   : > { %v269_v17 = vpop.f32.mrf.mxu1 }
 0x125   : > { %v270_v19 = vadd.f32 %v269_v17, %v250_v18 }
 0x127   : > { %v783_v20 = vmul.f32 -1.442695, %v270_v19 }
 0x12a   : > { %v309_v11 = vpop.f32.mrf.mxu3 }
 0x12b   : > { %v1169_v12 = vadd.f32 %v309_v11, %v290_v10  ;;  %v390_v10 = vld [vmem:[#allocation14 + $0x10] sm:$0xff]  ;;  %v391_v11 = vld [vmem:[#allocation14 + $0x18] sm:$0xff] }
 0x12c   : > { %440 = vmatpush.msrb.mxu1 %v390_v10  ;;  %460 = vmatpush.msrb.mxu3 %v391_v11 }
 0x12d   : > { %827 = vtanh.f32 %v1169_v12  ;;  %v784_v7 = vmul.f32 -1.442695, %v1169_v12 }
 0x12e   : > { %829 = vpow2.f32 %v783_v20 }
 0x133   : > { %v828_v13 = vpop.eup %827 }
 0x134   : > { %357 = vrot.lane.b32.xlu1 %v828_v13, %s1057_s30  ;;  %v830_v21 = vpop.eup %829  ;;  %v388_v13 = vld [vmem:[#allocation14] sm:$0xff] }
 0x135   : > { %v318_v22 = vadd.f32 1.0, %v830_v21  ;;  %441 = vmatpush.msrb.mxu1 %v388_v13 }
 0x137   : > { %831 = vrcp.f32 %v318_v22  ;;  %v331_v29 = vand.u32 2147483648, %v318_v22  ;;  %vm325_vm6 = vweird.f32 %v318_v22  ;;  %v329_v30 = vand.u32 2147483647, %v318_v22 }
 0x139   : > { %v332_v32 = vor.u32 1.1754944e-38, %v331_v29  ;;  %vm330_vm8 = vcmp.eq.f32.partialorder %v329_v30, 8.507059e+37  ;;  %v420_v29 = vld [vmem:[%s1255_s7] sm:$0x3] }
 0x13a   : > { %v423_v30 = vperm.slane %v420_v29, 1 }
 0x13c   : > { %352 = vrot.lane.b32.xlu1 %v163_v14, %s1057_s30  ;;  %v389_v14 = vld [vmem:[#allocation14 + $0x8] sm:$0xff] }
 0x13d   : > { %v832_v24 = vpop.eup %831  ;;  %461 = vmatpush.msrb.mxu3 %v389_v14 }
 0x13e   : > { %v321_v25 = vmul.f32 %v832_v24, %v318_v22  ;;  %vm326_vm5 = vweird.f32 %v832_v24 }
 0x13f   : > { %vm327_vm7 = vmor %vm325_vm6, %vm326_vm5 }
 0x140   : > { %v322_v26 = vsub.f32 1.0, %v321_v25 }
 0x142   : > { %v323_v27 = vmul.f32 %v832_v24, %v322_v26  ;;  %v384_v26 = vpop.permute.xlu0 %383 }
 0x144   : > { %v324_v28 = vadd.f32 %v832_v24, %v323_v27 }
 0x146   : > { %v328_v31 = vsel %vm327_vm7, %v832_v24, %v324_v28 }
 0x147   : > { %v333_v34 = vsel %vm330_vm8, %v332_v32, %v328_v31 }
 0x1a6   : > { %v358_v33 = vpop.permute.xlu1 %357 }
 0x1a7   : > { %v360_v35 = vmul.f32 %v358_v33, %v333_v34 }
 0x1a9   : > { %362 = vrot.lane.b32.xlu2 %v360_v35, %s1057_s30 }
 0x1ae   : > { %v353_v56 = vpop.permute.xlu1 %352 }
 0x1af   : > { %v355_v61 = vmul.f32 %v353_v56, %v333_v34  ;;  %v422_v34 = vperm.slane %v420_v29, 0 }
 0x203   : > { %v363_v62 = vpop.permute.xlu2 %362 }
 0x204   : > { %v1176_v1 = vadd.f32 %v363_v62, %v355_v61 }
 0x206   : > { %833 = vtanh.f32 %v1176_v1 }
 0x207   : > { %835 = vpow2.f32 %v784_v7 }
 0x20c   : > { %v834_v6 = vpop.eup %833 }
 0x20d   : > { %368 = vrot.lane.b32.xlu2 %v834_v6, %s1057_s30  ;;  %v836_v8 = vpop.eup %835 }
 0x20e   : > { %v319_v9 = vadd.f32 1.0, %v836_v8 }
 0x210   : > { %837 = vrcp.f32 %v319_v9  ;;  %v346_v20 = vand.u32 2147483648, %v319_v9  ;;  %vm340_vm10 = vweird.f32 %v319_v9  ;;  %v344_v21 = vand.u32 2147483647, %v319_v9 }
 0x212   : > { %v347_v23 = vor.u32 1.1754944e-38, %v346_v20  ;;  %vm345_vm12 = vcmp.eq.f32.partialorder %v344_v21, 8.507059e+37  ;;  %v597_v20 = vld [vmem:[#allocation15 + $0x18] sm:$0xff]  ;;  %v596_v21 = vld [vmem:[#allocation15 + $0x10] sm:$0xff] }
 0x213   : > { %642 = vmatpush.msrb.mxu2 %v597_v20 }
 0x215   : > { %506 = vrot.lane.b32.xlu2 %v381_v15, %s1057_s30  ;;  %643 = vmatpush.msrb.mxu2 %v596_v21 }
 0x216   : > { %v838_v16 = vpop.eup %837 }
 0x217   : > { %v336_v17 = vmul.f32 %v838_v16, %v319_v9  ;;  %vm341_vm9 = vweird.f32 %v838_v16 }
 0x218   : > { %vm342_vm11 = vmor %vm340_vm10, %vm341_vm9  ;;  %vm579_vm9 = vcmask 1040384   ;;  %vm584_vm10 = vcmask 1041408  }
 0x219   : > { %v337_v18 = vsub.f32 1.0, %v336_v17 }
 0x21b   : > { %v338_v19 = vmul.f32 %v838_v16, %v337_v18 }
 0x21d   : > { %v339_v12 = vadd.f32 %v838_v16, %v338_v19  ;;  %v595_v19 = vld [vmem:[#allocation15 + $0x8] sm:$0xff] }
 0x21e   : > { %619 = vmatpush.msrb.mxu0 %v595_v19 }
 0x21f   : > { %v343_v22 = vsel %vm342_vm11, %v838_v16, %v339_v12  ;;  %v594_v12 = vld [vmem:[#allocation15] sm:$0xff]  ;;  %vm589_vm11 = vcmask 1042432  }
 0x220   : > { %v348_v24 = vsel %vm345_vm12, %v347_v23, %v343_v22  ;;  %620 = vmatpush.msrb.mxu0 %v594_v12  ;;  %v601_v22 = vld [vmem:[#allocation15 + $0x38] sm:$0xff]  ;;  %v600_v23 = vld [vmem:[#allocation15 + $0x30] sm:$0xff]  ;;  %vm694_vm12 = vcmask 1043456  }
 0x221   : > { %688 = vmatpush.msra.mxu2 %v601_v22 }
 0x223   : > { %689 = vmatpush.msra.mxu2 %v600_v23 }
 0x267   : > { %v369_v25 = vpop.permute.xlu2 %368 }
 0x268   : > { %v371_v27 = vmul.f32 %v369_v25, %v348_v24  ;;  %v599_v24 = vld [vmem:[#allocation15 + $0x28] sm:$0xff]  ;;  %v598_v25 = vld [vmem:[#allocation15 + $0x20] sm:$0xff] }
 0x269   : > { %665 = vmatpush.msra.mxu0 %v599_v24 }
 0x26a   : > { %372 = vst.msk [vmem:[#allocation2] sm:$0xf] %vm132_vm1, %v371_v27  ;;  %v387_v28 = vsel %vm386_vm13, %v371_v27, %v384_v26 }
 0x26b   : > { %442 = vmatmul.f32.vlgmr.msrb.gmra.mxu1 %v387_v28  ;;  %462 = vmatmul.f32.vlgmr.msrb.gmra.mxu3 %v387_v28 }
 0x26c   : > { %666 = vmatpush.msra.mxu0 %v598_v25 }
 0x26f   : > { %v507_v52 = vpop.permute.xlu2 %506 }
 0x2e8   : > { %v443_v35 = vpop.f32.mrf.mxu1 }
 0x2e9   : > { %v444_v36 = vadd.f32 %v443_v35, %v422_v34 }
 0x2eb   : > { %v785_v37 = vmul.f32 -1.442695, %v444_v36 }
 0x2ee   : > { %v463_v31 = vpop.f32.mrf.mxu3 }
 0x2ef   : > { %v464_v32 = vadd.f32 %v463_v31, %v423_v30 }
 0x2f1   : > { %839 = vtanh.f32 %v464_v32  ;;  %v786_v57 = vmul.f32 -1.442695, %v464_v32 }
 0x2f2   : > { %841 = vpow2.f32 %v785_v37 }
 0x2f7   : > { %v840_v33 = vpop.eup %839 }
 0x2f8   : > { %511 = vrot.lane.b32.xlu1 %v840_v33, %s1057_s30  ;;  %v842_v38 = vpop.eup %841 }
 0x2f9   : > { %v472_v39 = vadd.f32 1.0, %v842_v38 }
 0x2fb   : > { %843 = vrcp.f32 %v472_v39  ;;  %v485_v45 = vand.u32 2147483648, %v472_v39  ;;  %vm479_vm15 = vweird.f32 %v472_v39  ;;  %v483_v46 = vand.u32 2147483647, %v472_v39 }
 0x2fd   : > { %v486_v48 = vor.u32 1.1754944e-38, %v485_v45  ;;  %vm484_vm4 = vcmp.eq.f32.partialorder %v483_v46, 8.507059e+37 }
 0x301   : > { %v844_v40 = vpop.eup %843 }
 0x302   : > { %v475_v41 = vmul.f32 %v844_v40, %v472_v39  ;;  %vm480_vm14 = vweird.f32 %v844_v40 }
 0x303   : > { %vm481_vm2 = vmor %vm479_vm15, %vm480_vm14 }
 0x304   : > { %v476_v42 = vsub.f32 1.0, %v475_v41 }
 0x306   : > { %v477_v43 = vmul.f32 %v844_v40, %v476_v42 }
 0x308   : > { %v478_v44 = vadd.f32 %v844_v40, %v477_v43 }
 0x30a   : > { %v482_v47 = vsel %vm481_vm2, %v844_v40, %v478_v44 }
 0x30b   : > { %v487_v49 = vsel %vm484_vm4, %v486_v48, %v482_v47 }
 0x30c   : > { %v509_v53 = vmul.f32 %v507_v52, %v487_v49 }
 0x36a   : > { %v512_v50 = vpop.permute.xlu1 %511 }
 0x36b   : > { %v514_v51 = vmul.f32 %v512_v50, %v487_v49 }
 0x36d   : > { %516 = vrot.lane.b32.xlu0 %v514_v51, %s1057_s30 }
 0x3df   : > { %v517_v54 = vpop.permute.xlu0 %516 }
 0x3e0   : > { %v1188_v55 = vadd.f32 %v517_v54, %v509_v53 }
 0x3e2   : > { %845 = vtanh.f32 %v1188_v55 }
 0x3e3   : > { %847 = vpow2.f32 %v786_v57 }
 0x3e8   : > { %v846_v56 = vpop.eup %845 }
 0x3e9   : > { %522 = vrot.lane.b32.xlu1 %v846_v56, %s1057_s30  ;;  %v848_v58 = vpop.eup %847 }
 0x3ea   : > { %v473_v59 = vadd.f32 1.0, %v848_v58 }
 0x3ec   : > { %849 = vrcp.f32 %v473_v59  ;;  %v500_v4 = vand.u32 2147483648, %v473_v59  ;;  %vm494_vm6 = vweird.f32 %v473_v59  ;;  %v498_v5 = vand.u32 2147483647, %v473_v59 }
 0x3ee   : > { %v501_v7 = vor.u32 1.1754944e-38, %v500_v4  ;;  %vm499_vm8 = vcmp.eq.f32.partialorder %v498_v5, 8.507059e+37 }
 0x3f2   : > { %v850_v60 = vpop.eup %849 }
 0x3f3   : > { %v490_v61 = vmul.f32 %v850_v60, %v473_v59  ;;  %vm495_vm5 = vweird.f32 %v850_v60 }
 0x3f4   : > { %vm496_vm7 = vmor %vm494_vm6, %vm495_vm5 }
 0x3f5   : > { %v491_v62 = vsub.f32 1.0, %v490_v61 }
 0x3f7   : > { %v492_v63 = vmul.f32 %v850_v60, %v491_v62 }
 0x3f9   : > { %v493_v0 = vadd.f32 %v850_v60, %v492_v63 }
 0x3fb   : > { %v497_v6 = vsel %vm496_vm7, %v850_v60, %v493_v0  ;;  %v826_v60 = vld [vmem:[%s1257_s9] ss:$0 sm:$0xff] }
 0x3fc   : > { %v502_v8 = vsel %vm499_vm8, %v501_v7, %v497_v6 }
 0x45b   : > { %v523_v9 = vpop.permute.xlu1 %522 }
 0x45c   : > { %v1192_v10 = vmul.f32 %v523_v9, %v502_v8 }
 0x45e   : > { %526 = vst.msk [vmem:[#allocation2 + $0x4] sm:$0xf] %vm132_vm1, %v1192_v10  ;;  %v539_v11 = vperm.slane %v1192_v10, 0  ;;  %v533_v13 = vrot.slane %v1192_v10, 1  ;;  %v535_v15 = vrot.slane %v1192_v10, 3  ;;  %v534_v17 = vrot.slane %v1192_v10, 2 }
 0x460   : > { %567 = vrot.lane.b32.xlu1 %v539_v11, %s1058_s13  ;;  %555 = vrot.lane.b32.xlu0 %v539_v11, %s1059_s14  ;;  %v540_v14 = vperm.slane %v533_v13, 0  ;;  %v542_v16 = vperm.slane %v535_v15, 0  ;;  %v541_v18 = vperm.slane %v534_v17, 0 }
 0x461   : > { %543 = vrot.lane.b32.xlu2 %v539_v11, %s1060_s15 }
 0x468   : > { %569 = vrot.lane.b32.xlu1 %v540_v14, %s1058_s13  ;;  %557 = vrot.lane.b32.xlu0 %v540_v14, %s1059_s14 }
 0x469   : > { %545 = vrot.lane.b32.xlu2 %v540_v14, %s1060_s15 }
 0x470   : > { %573 = vrot.lane.b32.xlu1 %v542_v16, %s1058_s13  ;;  %561 = vrot.lane.b32.xlu0 %v542_v16, %s1059_s14 }
 0x471   : > { %549 = vrot.lane.b32.xlu2 %v542_v16, %s1060_s15 }
 0x478   : > { %571 = vrot.lane.b32.xlu1 %v541_v18, %s1058_s13  ;;  %559 = vrot.lane.b32.xlu0 %v541_v18, %s1059_s14 }
 0x479   : > { %547 = vrot.lane.b32.xlu2 %v541_v18, %s1060_s15 }
 0x4bb   : > { %v544_v26 = vpop.permute.xlu2 %543 }
 0x4bc   : > { %v580_v27 = vsel %vm579_vm9, %v1192_v10, %v544_v26 }
 0x4c3   : > { %v546_v30 = vpop.permute.xlu2 %545 }
 0x4c4   : > { %v581_v33 = vsel %vm579_vm9, %v533_v13, %v546_v30 }
 0x4cb   : > { %v550_v38 = vpop.permute.xlu2 %549 }
 0x4cc   : > { %v583_v39 = vsel %vm579_vm9, %v535_v15, %v550_v38 }
 0x4d2   : > { %v568_v28 = vpop.permute.xlu1 %567  ;;  %v556_v29 = vpop.permute.xlu0 %555 }
 0x4d3   : > { %v585_v31 = vsel %vm584_vm10, %v580_v27, %v556_v29  ;;  %v548_v44 = vpop.permute.xlu2 %547 }
 0x4d4   : > { %v590_v32 = vsel %vm589_vm11, %v585_v31, %v568_v28  ;;  %v582_v45 = vsel %vm579_vm9, %v534_v17, %v548_v44 }
 0x4d5   : > { %787 = vmatmul.msk.f32.vlgmr.msrb.gmra.mxu0 %vm168_vm3, %v590_v32 }
 0x4da   : > { %v570_v34 = vpop.permute.xlu1 %569  ;;  %v558_v35 = vpop.permute.xlu0 %557 }
 0x4db   : > { %v586_v36 = vsel %vm584_vm10, %v581_v33, %v558_v35 }
 0x4dc   : > { %v591_v37 = vsel %vm589_vm11, %v586_v36, %v570_v34 }
 0x4dd   : > { %788 = vmatmul.msk.f32.vlgmr.msrb.gmra.mxu2 %vm168_vm3, %v591_v37 }
 0x4e2   : > { %v574_v40 = vpop.permute.xlu1 %573  ;;  %v562_v41 = vpop.permute.xlu0 %561 }
 0x4e3   : > { %v588_v42 = vsel %vm584_vm10, %v583_v39, %v562_v41 }
 0x4e4   : > { %v593_v43 = vsel %vm589_vm11, %v588_v42, %v574_v40 }
 0x4e5   : > { %790 = vmatmul.msk.f32.vlgmr.msra.gmra.mxu2 %vm168_vm3, %v593_v43 }
 0x4ea   : > { %v572_v46 = vpop.permute.xlu1 %571  ;;  %v560_v47 = vpop.permute.xlu0 %559 }
 0x4eb   : > { %v587_v48 = vsel %vm584_vm10, %v582_v45, %v560_v47 }
 0x4ec   : > { %v592_v49 = vsel %vm589_vm11, %v587_v48, %v572_v46 }
 0x4ed   : > { %789 = vmatmul.msk.f32.vlgmr.msra.gmra.mxu0 %vm168_vm3, %v592_v49 }
 0x552   : > { %v622_v51 = vpop.f32.mrf.mxu0 }
 0x553   : > { %v695_v53 = vsel %vm694_vm12, %v622_v51, 0.0 }
 0x560   : > { %v645_v50 = vpop.f32.mrf.mxu2 }
 0x561   : > { %v696_v52 = vsel %vm694_vm12, %v645_v50, 0.0 }
 0x562   : > { %v697_v54 = vadd.f32 %v696_v52, %v695_v53 }
 0x568   : > { %v691_v56 = vpop.f32.mrf.mxu2 }
 0x569   : > { %v700_v61 = vsel %vm694_vm12, %v691_v56, 0.0 }
 0x56a   : > { %v668_v57 = vpop.f32.mrf.mxu0 }
 0x56b   : > { %v698_v58 = vsel %vm694_vm12, %v668_v57, 0.0 }
 0x56c   : > { %v699_v59 = vadd.f32 %v698_v58, %v697_v54 }
 0x56e   : > { %v701_v62 = vadd.f32 %v700_v61, %v699_v59 }
 0x570   : > { %v706_v63 = vadd.f32 %v826_v60, %v701_v62 }
 0x572   : > { %v707_v0 = vsel %vm694_vm12, %v706_v63, -inf }
 0x573   : > { %708 = vmax.xlane.f32.xlu2 %v707_v0 }
 0x58b   : > { %374 = vrot.lane.b32.xlu2 %v1176_v1, %s1057_s30  ;;  %v716_v1 = vld [vmem:[#allocation5] sm:$0xf] }
 0x58c   : > { %vm717_vm14 = vcmp.gt.s32.totalorder %v716_v1, 0 }
 0x5e6   : > { %v709_v4 = vpop.xlane.xlu2 %708 }
 0x5e7   : > { %v723_v5 = vsub.f32 %v706_v63, %v709_v4  ;;  %vm710_vm3 = vcmp.eq.f32.partialorder %v706_v63, %v709_v4 }
 0x5e8   : > { %v711_v6 = vsel %vm710_vm3, %v145_v3, 128.0 }
 0x5e9   : > { %v724_v7 = vmul.f32 1.442695, %v723_v5  ;;  %v712_v8 = vsel %vm694_vm12, %v711_v6, inf }
 0x5ea   : > { %713 = vmin.xlane.f32.xlu1 %v712_v8 }
 0x5eb   : > { %851 = vpow2.f32 %v724_v7 }
 0x5ee   : > { %v375_v9 = vpop.permute.xlu2 %374 }
 0x5ef   : > { %377 = vst.msk [vmem:[#allocation3] sm:$0xf] %vm132_vm1, %v375_v9 }
 0x5f1   : > { %v852_v10 = vpop.eup %851 }
 0x5f2   : > { %v726_v11 = vsel %vm694_vm12, %v852_v10, 0.0 }
 0x5f3   : > { %727 = vadd.xlane.f32.xlu0 %v726_v11 }
 0x607   : > { %528 = vrot.lane.b32.xlu0 %v1188_v55, %s1057_s30 }
 0x65d   : > { %v714_v13 = vpop.xlane.xlu1 %713 }
 0x65e   : > { %vm791_vm13 = vcmp.lt.s32.totalorder %v714_v13, 0  ;;  %v792_v14 = vceil.f32 %v714_v13  ;;  %v793_v15 = vfloor.f32 %v714_v13 }
 0x660   : > { %v794_v16 = vsel %vm791_vm13, %v792_v14, %v793_v15 }
 0x661   : > { %v795_v17 = vcvt.f32.s32 %v794_v16 }
 0x663   : > { %v718_v18 = vsel %vm717_vm14, 1, %v795_v17 }
 0x664   : > { %vm719_vm15 = vcmp.eq.s32.totalorder %v718_v18, 1  ;;  %722 = vst.msk [vmem:[#allocation4] sm:$0xf] %vm140_vm0, %v718_v18 }
 0x665   : > { %v720_v19 = vsel %vm719_vm15, 1, %v716_v1 }
 0x666   : > { %721 = vst.msk [vmem:[#allocation5] sm:$0xf] %vm140_vm0, %v720_v19  ;;  %v728_v12 = vpop.xlane.xlu0 %727 }
 0x667   : > { %853 = vrcp.f32 %v728_v12  ;;  %v740_v22 = vand.u32 2147483648, %v728_v12  ;;  %v738_v24 = vand.u32 2147483647, %v728_v12  ;;  %vm734_vm4 = vweird.f32 %v728_v12 }
 0x669   : > { %v741_v26 = vor.u32 1.1754944e-38, %v740_v22  ;;  %vm739_vm6 = vcmp.eq.f32.partialorder %v738_v24, 8.507059e+37 }
 0x66d   : > { %v854_v20 = vpop.eup %853 }
 0x66e   : > { %v730_v55 = vmul.f32 %v854_v20, %v728_v12  ;;  %vm735_vm2 = vweird.f32 %v854_v20 }
 0x66f   : > { %vm736_vm5 = vmor %vm734_vm4, %vm735_vm2 }
 0x670   : > { %v731_v21 = vsub.f32 1.0, %v730_v55 }
 0x672   : > { %v732_v23 = vmul.f32 %v854_v20, %v731_v21 }
 0x674   : > { %v733_v25 = vadd.f32 %v854_v20, %v732_v23 }
 0x676   : > { %v737_v27 = vsel %vm736_vm5, %v854_v20, %v733_v25 }
 0x677   : > { %v742_v28 = vsel %vm739_vm6, %v741_v26, %v737_v27  ;;  %150 = sbr.rel (!%p148_p0) target bundleno = 36 (0x24), region = 95 }
 0x678   : > { %v743_v29 = vmul.f32 %v852_v10, %v742_v28 }
 0x679   : > { %v529_v30 = vpop.permute.xlu0 %528 }
 0x67a   : > { %745 = vst [vmem:[%s744_s0] sm:$0xf] %v743_v29 }
 0x67b   : > { %531 = vst.msk [vmem:[#allocation3 + $0x4] sm:$0xf] %vm132_vm1, %v529_v30  ;;  %758 = dma.vmem_to_hbm [thread:$0]  (%p148_p0), %s751_s23, 384, %s753_s19, [#allocation8], %s1042_s21, %s1042_s21, %s1043_s22  }
 0x67c   :  { %1035 = dma.done.wait [#allocation8], 384  }
 0x67d   :  { %1036 = vsyncadd [#allocation8], 4294966912 }
 0x67e   :  { %763 = vsyncpa [#allocation7], 1 }
 0x67f   :  { %764 = vsyncpa [#allocation10], 1 }
 0x680   :  { %765 = vsyncpa [#allocation13], 1 }
 0x681   :  { %766 = vsyncpa [#allocation16], 1 }
 0x682   :  { %767 = vsyncpa [#allocation8], 1 }

</bundles_post_ra>
